<compile_context>
chip_gen: v5e
topology: v5e:2x2
jax: 0.10.0
libtpu: 0.0.40
codegen_flags: <defaults>
</compile_context>

<pallas_src>
import functools

import jax
import jax.numpy as jnp
from jax.experimental import pallas as pl
from jax.experimental.pallas import tpu as pltpu

IN_FEATURES = 17 * 32      # 544, as in the PyTorch module
CLASS_COUNT = 10           # small synthetic class count
LANE = 128
EPS = 1e-5


def _round_up(n, m):
    return ((n + m - 1) // m) * m


def _is_v5e():
    """Detect a v5e-class chip (smaller scoped-VMEM default, f32-slow MXU)."""
    try:
        kind = jax.devices()[0].device_kind.lower()
    except Exception:
        return False
    return ("v5 lite" in kind) or ("v5e" in kind) or ("v5litepod" in kind)


def _choose_batch_tile(b, tb_max):
    """Batch tile: multiple of 8, <= tb_max, minimal junk rows in the last block,
    and >= 2 grid steps when possible so both v7x TensorCores get work."""
    if b < 16:
        return _round_up(max(b, 1), 8)
    n_blocks = max(2, -(-b // tb_max))
    tb = _round_up(-(-b // n_blocks), 8)
    return min(tb, tb_max)


def _dist_kernel(x_ref, wt_ref, o_ref, *, scale, mxu_dtype):
    # x_ref: (TB, IN) f32   wt_ref: (IN, C_pad) f32   o_ref: (TB, C_pad) f32
    x = x_ref[...]
    a = x.astype(mxu_dtype)                       # bf16 on v5e, f32 elsewhere
    w = wt_ref[...].astype(mxu_dtype)
    acc = jnp.dot(a, w, preferred_element_type=jnp.float32)   # MXU, f32 accumulate
    sumsq = jnp.sum(x * x, axis=-1, keepdims=True)            # (TB, 1), f32 on raw x
    inv = scale / (jnp.sqrt(sumsq) + EPS)                     # exact eps-on-norm semantics
    o_ref[...] = (acc * inv).astype(o_ref.dtype)


def prepare_weight(weight_g, weight_v, c_pad=None):
    """WeightNorm(dim=0) effective weight, zero-padded on the class dim to a lane
    multiple and transposed to (IN, C_pad). Do this once at init/load time."""
    c, in_f = weight_v.shape
    c_pad = _round_up(c, LANE) if c_pad is None else c_pad
    v_norm = jnp.sqrt(jnp.sum(weight_v * weight_v, axis=1, keepdims=True))
    w_eff = weight_g * weight_v / v_norm                    # (C, IN)
    w_eff = jnp.pad(w_eff, ((0, c_pad - c), (0, 0)))        # zero rows -> zero logits
    return jnp.asarray(w_eff.T, jnp.float32)                # (IN, C_pad)


def dist_classifier_forward(x, wt_padded, class_count, scale_factor,
                            *, use_bf16_matmul=None):
    """x: (B, IN) f32; wt_padded: (IN, C_pad) f32 from prepare_weight()."""
    b, in_f = x.shape
    in_f2, c_pad = wt_padded.shape
    assert in_f == in_f2

    is_v5e = _is_v5e()
    if use_bf16_matmul is None:
        use_bf16_matmul = is_v5e          # f32 matmul is MXU-bound on v5e
    tb_max = 1024 if is_v5e else 2048     # keep x double-buffers inside scoped VMEM
    tb = _choose_batch_tile(b, tb_max)
    grid_b = pl.cdiv(b, tb)

    kernel = functools.partial(
        _dist_kernel,
        scale=float(scale_factor),
        mxu_dtype=jnp.bfloat16 if use_bf16_matmul else jnp.float32,
    )

    out = pl.pallas_call(
        kernel,
        out_shape=jax.ShapeDtypeStruct((b, c_pad), jnp.float32),
        grid=(grid_b,),
        in_specs=[
            pl.BlockSpec((tb, in_f), lambda i: (i, 0)),      # batch-tiled x (ragged tail OK)
            pl.BlockSpec((in_f, c_pad), lambda i: (0, 0)),   # VMEM-resident weight
        ],
        out_specs=pl.BlockSpec((tb, c_pad), lambda i: (i, 0)),  # lane-dense store
        compiler_params=pltpu.CompilerParams(
            dimension_semantics=("parallel",),               # v7x: 2 TCs share the batch
        ),
    )(x, wt_padded)
    return out[:, :class_count]


if __name__ == "__main__":
    key = jax.random.PRNGKey(0)
    k_x, k_v, k_g = jax.random.split(key, 3)

    batch = 2
    x = jax.random.normal(k_x, (batch, IN_FEATURES), jnp.float32)

    # WeightNorm(dim=0) parameterization of nn.Linear(544, class_count, bias=False)
    bound = 1.0 / (IN_FEATURES ** 0.5)
    weight_v = jax.random.uniform(
        k_v, (CLASS_COUNT, IN_FEATURES), jnp.float32, -bound, bound
    )
    # PyTorch inits g = ||v|| per row; perturb so the g-path is actually exercised.
    weight_g = jnp.sqrt(jnp.sum(weight_v ** 2, axis=1, keepdims=True)) * (
        1.0 + 0.1 * jax.random.normal(k_g, (CLASS_COUNT, 1), jnp.float32)
    )

    scale_factor = 2.0 if CLASS_COUNT <= 200 else 10.0
    wt = prepare_weight(weight_g, weight_v)    # cached once in a real serving path

    out = dist_classifier_forward(x, wt, CLASS_COUNT, scale_factor)
    out = jax.block_until_ready(out)

    # Pure-JAX reference of the module's forward (class_wise_learnable_norm=True).
    w_eff = weight_g * weight_v / jnp.linalg.norm(weight_v, axis=1, keepdims=True)
    x_n = x / (jnp.linalg.norm(x, axis=1, keepdims=True) + EPS)
    ref = scale_factor * (x_n @ w_eff.T)

    # bf16 MXU operands are only used on v5e -> loosen tolerance there.
    tol = 5e-2 if _is_v5e() else 1e-4
    assert out.shape == (batch, CLASS_COUNT)
    assert jnp.allclose(out, ref, atol=tol, rtol=tol), (
        f"max abs err {jnp.max(jnp.abs(out - ref))}"
    )
    print("KERNEL_OK")
</pallas_src>

<mosaic_0001>
module attributes {stable_mosaic.version = 11 : i64} {
  func.func @_dist_kernel(%arg0: i32, %arg1: memref<8x544xf32, #tpu.memory_space<vmem>>, %arg2: memref<544x128xf32, #tpu.memory_space<vmem>>, %arg3: memref<8x128xf32, #tpu.memory_space<vmem>>) attributes {dimension_semantics = [#tpu.dimension_semantics<parallel>], iteration_bounds = array<i64: 1>, scalar_prefetch = 0 : i64, scratch_operands = 0 : i64, tpu.core_type = #tpu.core_type<tc>, window_params = [{transform_indices = @transform_0, window_bounds = array<i64: 8, 544>}, {pipeline_mode = #tpu.pipeline_mode<synchronous>, transform_indices = @transform_1, window_bounds = array<i64: 544, 128>}, {transform_indices = @transform_2, window_bounds = array<i64: 8, 128>}]} {
    %c0 = arith.constant 0 : index
    %c0_0 = arith.constant 0 : index
    %0 = vector.load %arg1[%c0, %c0_0] : memref<8x544xf32, #tpu.memory_space<vmem>>, vector<8x544xf32>
    %c0_1 = arith.constant 0 : index
    %c0_2 = arith.constant 0 : index
    %1 = vector.load %arg2[%c0_1, %c0_2] : memref<544x128xf32, #tpu.memory_space<vmem>>, vector<544x128xf32>
    %cst = arith.constant dense<0.000000e+00> : vector<8x128xf32>
    %2 = tpu.matmul %0, %1, %cst {dimension_numbers = #tpu.dot_dimension_numbers<[1], [0], [0], [1], [0, 0, 1, 1], [], []>} : vector<8x544xf32>, vector<544x128xf32>, vector<8x128xf32> -> vector<8x128xf32>
    %3 = arith.mulf %0, %0 : vector<8x544xf32>
    %cst_3 = arith.constant dense<0.000000e+00> : vector<8xf32>
    %4 = vector.multi_reduction <add>, %3, %cst_3 [1] : vector<8x544xf32> to vector<8xf32>
    %5 = vector.shape_cast %4 : vector<8xf32> to vector<8x1xf32>
    %6 = math.sqrt %5 : vector<8x1xf32>
    %cst_4 = arith.constant 9.99999974E-6 : f32
    %7 = vector.broadcast %cst_4 : f32 to vector<8x1xf32>
    %8 = arith.addf %6, %7 : vector<8x1xf32>
    %cst_5 = arith.constant 2.000000e+00 : f32
    %9 = vector.broadcast %cst_5 : f32 to vector<8x1xf32>
    %10 = arith.divf %9, %8 : vector<8x1xf32>
    %11 = vector.broadcast %10 : vector<8x1xf32> to vector<8x128xf32>
    %12 = arith.mulf %2, %11 : vector<8x128xf32>
    %c0_6 = arith.constant 0 : index
    %c0_7 = arith.constant 0 : index
    %13 = vector.load %arg3[%c0_6, %c0_7] : memref<8x128xf32, #tpu.memory_space<vmem>>, vector<8x128xf32>
    tpu.vector_store %arg3[%c0_6, %c0_7], %12 {strides = array<i32>} : memref<8x128xf32, #tpu.memory_space<vmem>>, vector<8x128xf32>,
    return
  }
  func.func @transform_0(%arg0: i32) -> (i32, i32) {
    %c0_i32 = arith.constant 0 : i32
    %c0_i32_0 = arith.constant 0 : i32
    return %arg0, %c0_i32 : i32, i32
  }
  func.func @transform_1(%arg0: i32) -> (i32, i32) {
    %c0_i32 = arith.constant 0 : i32
    %c0_i32_0 = arith.constant 0 : i32
    %c0_i32_1 = arith.constant 0 : i32
    return %c0_i32, %c0_i32_0 : i32, i32
  }
  func.func @transform_2(%arg0: i32) -> (i32, i32) {
    %c0_i32 = arith.constant 0 : i32
    %c0_i32_0 = arith.constant 0 : i32
    return %arg0, %c0_i32 : i32, i32
  }
}

</mosaic_0001>

<bundles_post_ra>
// kernel: tpu_custom_call.1
= control target key start
LH: loop header
LB: loop body
LE: loop exit
PB: predicated region body
PF: predicated region fallthrough
CT: control target
= control target key end

     0   :  { %7 = vsyncpa [#allocation3], 0  ;;  %s506_s0 = inlined_call_operand.hbm [shape: f32[2,544], index: 0, kind: input, shape index: {}]   ;;  %s507_s1 = inlined_call_operand.hbm [shape: f32[544,128], index: 1, kind: input, shape index: {}]   ;;  %s508_s2 = inlined_call_operand.hbm [shape: f32[2,128], index: 2, kind: output, shape index: {}]  }
   0x1   :  { %8 = vsyncpa [#allocation6], 0 }
   0x2   :  { %9 = vsyncpa [#allocation4], 0 }
   0x3   :  { %13 = vsyncadd [#allocation3], 480  ;;  %s14_s11 = sshll.u32 %s506_s0, 4  ;;  %s445_s12 = smov [#allocation2]   ;;  %s15_s11 = int_to_ptr.hbm [resolvable:$true] %s14_s11 }
   0x4   :  { %s16_s13 = sshll.u32 %s445_s12, 4  ;;  %s27_s16 = sshll.u32 %s507_s1, 4  ;;  %s17_s13 = int_to_ptr.vmem [resolvable:$true] %s16_s13  ;;  %s28_s16 = int_to_ptr.hbm [resolvable:$true] %s27_s16 }
   0x5   :  { %s446_s17 = smov 160   ;;  %s447_s18 = smov 10  }
   0x6   :  { %22 = dma.hbm_to_vmem [thread:$0]  %s15_s11, 160, %s17_s13, [#allocation3], %s446_s17, %s446_s17, %s447_s18  }
   0x7   :  { %s448_s19 = smov [#allocation5]   ;;  %s449_s21 = smov 128  }
   0x8   :  { %s29_s20 = sshll.u32 %s448_s19, 4  ;;  %s450_s22 = smov 8   ;;  %s30_s20 = int_to_ptr.vmem [resolvable:$true] %s29_s20 }
   0x9   :  { %35 = dma.hbm_to_vmem [thread:$0]  %s28_s16, 8704, %s30_s20, [#allocation6], %s449_s21, %s449_s21, %s450_s22  }
   0xa   :  { %439 = dma.done.wait [#allocation3], 640  }
   0xb   :  { %440 = vsyncadd [#allocation3], 4294966656 }
   0xc   :  { %441 = dma.done.wait [#allocation6], 8704  }
   0xd   :  { %442 = vsyncadd [#allocation6], 4294958592  ;;  %v99_v0 = vld [vmem:[#allocation5 + $0x178] sm:$0xff]  ;;  %v98_v2 = vld [vmem:[#allocation5 + $0x170] sm:$0xff]  ;;  %vm152_vm0 = vcmask 261120  }
   0xe   :  { %v67_v1 = vld [vmem:[#allocation5 + $0x78] sm:$0xff]  ;;  %195 = vmatpush.msra.mxu2 %v99_v0  ;;  %v66_v4 = vld [vmem:[#allocation5 + $0x70] sm:$0xff]  ;;  %v97_v6 = vld [vmem:[#allocation5 + $0x168] sm:$0xff] }
   0xf   :  { %155 = vmatpush.msra.mxu0 %v67_v1  ;;  %v115_v3 = vld [vmem:[#allocation5 + $0x1f8] sm:$0xff]  ;;  %v114_v7 = vld [vmem:[#allocation5 + $0x1f0] sm:$0xff]  ;;  %v65_v8 = vld [vmem:[#allocation5 + $0x68] sm:$0xff] }
  0x10   :  { %v83_v5 = vld [vmem:[#allocation5 + $0xf8] sm:$0xff]  ;;  %215 = vmatpush.msra.mxu3 %v115_v3  ;;  %196 = vmatpush.msra.mxu2 %v98_v2  ;;  %v82_v9 = vld [vmem:[#allocation5 + $0xf0] sm:$0xff]  ;;  %v113_v10 = vld [vmem:[#allocation5 + $0x1e8] sm:$0xff] }
  0x11   :  { %175 = vmatpush.msra.mxu1 %v83_v5  ;;  %156 = vmatpush.msra.mxu0 %v66_v4  ;;  %v96_v11 = vld [vmem:[#allocation5 + $0x160] sm:$0xff]  ;;  %v81_v13 = vld [vmem:[#allocation5 + $0xe8] sm:$0xff]  ;;  %v95_v16 = vld [vmem:[#allocation5 + $0x158] sm:$0xff] }
  0x12   :  { %216 = vmatpush.msra.mxu3 %v114_v7  ;;  %v64_v12 = vld [vmem:[#allocation5 + $0x60] sm:$0xff]  ;;  %197 = vmatpush.msra.mxu2 %v97_v6  ;;  %v63_v17 = vld [vmem:[#allocation5 + $0x58] sm:$0xff]  ;;  %v94_v18 = vld [vmem:[#allocation5 + $0x150] sm:$0xff] }
  0x13   :  { %176 = vmatpush.msra.mxu1 %v82_v9  ;;  %157 = vmatpush.msra.mxu0 %v65_v8  ;;  %v112_v14 = vld [vmem:[#allocation5 + $0x1e0] sm:$0xff]  ;;  %v111_v19 = vld [vmem:[#allocation5 + $0x1d8] sm:$0xff]  ;;  %v62_v21 = vld [vmem:[#allocation5 + $0x50] sm:$0xff] }
  0x14   :  { %v80_v15 = vld [vmem:[#allocation5 + $0xe0] sm:$0xff]  ;;  %217 = vmatpush.msra.mxu3 %v113_v10  ;;  %198 = vmatpush.msra.mxu2 %v96_v11  ;;  %v79_v20 = vld [vmem:[#allocation5 + $0xd8] sm:$0xff]  ;;  %v93_v24 = vld [vmem:[#allocation5 + $0x148] sm:$0xff] }
  0x15   :  { %177 = vmatpush.msra.mxu1 %v81_v13  ;;  %158 = vmatpush.msra.mxu0 %v64_v12  ;;  %v44_v22 = vld [vmem:[#allocation2] sm:$0xff]  ;;  %v46_v23 = vld [vmem:[#allocation2 + $0xa] sm:$0xff]  ;;  %v110_v25 = vld [vmem:[#allocation5 + $0x1d0] sm:$0xff] }
  0x16   :  { %218 = vmatpush.msra.mxu3 %v112_v14  ;;  %199 = vmatpush.msra.mxu2 %v95_v16  ;;  %v48_v26 = vld [vmem:[#allocation2 + $0x14] sm:$0xff]  ;;  %v475_v27 = vld [vmem:[#allocation2 + $0x8] sm:$0x3]  ;;  %v50_v28 = vld [vmem:[#allocation2 + $0x1e] sm:$0xff]  ;;  %128 = vst [vmem:[#allocation1] ss:$4 sm:$0xff] %v44_v22  ;;  %v255_v50 = vmul.f32 %v44_v22, %v44_v22  ;;  %v257_v54 = vmul.f32 %v46_v23, %v46_v23 }
  0x17   :  { %178 = vmatpush.msra.mxu1 %v80_v15  ;;  %159 = vmatpush.msra.mxu0 %v63_v17  ;;  %v61_v29 = vld [vmem:[#allocation5 + $0x48] sm:$0xff]  ;;  %130 = vst [vmem:[#allocation1 + $0x1] ss:$4 sm:$0xff] %v46_v23  ;;  %v78_v31 = vld [vmem:[#allocation5 + $0xd0] sm:$0xff]  ;;  %v92_v33 = vld [vmem:[#allocation5 + $0x140] sm:$0xff]  ;;  %v259_v60 = vmul.f32 %v48_v26, %v48_v26  ;;  %v261_v63 = vmul.f32 %v50_v28, %v50_v28 }
  0x18   :  { %219 = vmatpush.msra.mxu3 %v111_v19  ;;  %200 = vmatpush.msra.mxu2 %v94_v18  ;;  %v477_v30 = vld [vmem:[#allocation2 + $0x12] sm:$0x3]  ;;  %132 = vst [vmem:[#allocation1 + $0x2] ss:$4 sm:$0xff] %v48_v26  ;;  %v60_v34 = vld [vmem:[#allocation5 + $0x40] sm:$0xff]  ;;  %v91_v40 = vld [vmem:[#allocation5 + $0x138] sm:$0xff]  ;;  %v256_v0 = vmul.f32 %v475_v27, %v475_v27 }
  0x19   :  { %179 = vmatpush.msra.mxu1 %v79_v20  ;;  %160 = vmatpush.msra.mxu0 %v62_v21  ;;  %v109_v32 = vld [vmem:[#allocation5 + $0x1c8] sm:$0xff]  ;;  %v479_v36 = vld [vmem:[#allocation2 + $0x1c] sm:$0x3]  ;;  %134 = vst [vmem:[#allocation1 + $0x3] ss:$4 sm:$0xff] %v50_v28  ;;  %v108_v37 = vld [vmem:[#allocation5 + $0x1c0] sm:$0xff]  ;;  %v258_v3 = vmul.f32 %v477_v30, %v477_v30 }
  0x1a   :  { %220 = vmatpush.msra.mxu3 %v110_v25  ;;  %v77_v35 = vld [vmem:[#allocation5 + $0xc8] sm:$0xff]  ;;  %201 = vmatpush.msra.mxu2 %v93_v24  ;;  %v76_v38 = vld [vmem:[#allocation5 + $0xc0] sm:$0xff]  ;;  %v481_v39 = vld [vmem:[#allocation2 + $0x26] sm:$0x3]  ;;  %136 = vst [vmem:[#allocation1 + $0x20] ss:$4 sm:$0xff] %v475_v27  ;;  %v260_v8 = vmul.f32 %v479_v36, %v479_v36 }
  0x1b   :  { %180 = vmatpush.msra.mxu1 %v78_v31  ;;  %161 = vmatpush.msra.mxu0 %v61_v29  ;;  %v59_v41 = vld [vmem:[#allocation5 + $0x38] sm:$0xff]  ;;  %138 = vst [vmem:[#allocation1 + $0x21] ss:$4 sm:$0xff] %v477_v30  ;;  %v90_v44 = vld [vmem:[#allocation5 + $0x130] sm:$0xff]  ;;  %v89_v46 = vld [vmem:[#allocation5 + $0x128] sm:$0xff]  ;;  %v262_v10 = vmul.f32 %v481_v39, %v481_v39 }
  0x1c   :  { %221 = vmatpush.msra.mxu3 %v109_v32  ;;  %202 = vmatpush.msra.mxu2 %v92_v33  ;;  %v107_v42 = vld [vmem:[#allocation5 + $0x1b8] sm:$0xff]  ;;  %140 = vst [vmem:[#allocation1 + $0x22] ss:$4 sm:$0xff] %v479_v36  ;;  %v58_v45 = vld [vmem:[#allocation5 + $0x30] sm:$0xff]  ;;  %v57_v48 = vld [vmem:[#allocation5 + $0x28] sm:$0xff] }
  0x1d   :  { %181 = vmatpush.msra.mxu1 %v77_v35  ;;  %162 = vmatpush.msra.mxu0 %v60_v34  ;;  %v75_v43 = vld [vmem:[#allocation5 + $0xb8] sm:$0xff]  ;;  %142 = vst [vmem:[#allocation1 + $0x23] ss:$4 sm:$0xff] %v481_v39  ;;  %v106_v47 = vld [vmem:[#allocation5 + $0x1b0] sm:$0xff]  ;;  %v88_v51 = vld [vmem:[#allocation5 + $0x120] sm:$0xff] }
  0x1e   :  { %222 = vmatpush.msra.mxu3 %v108_v37  ;;  %203 = vmatpush.msra.mxu2 %v91_v40  ;;  %v74_v49 = vld [vmem:[#allocation5 + $0xb0] sm:$0xff]  ;;  %v105_v52 = vld [vmem:[#allocation5 + $0x1a8] sm:$0xff]  ;;  %v56_v53 = vld [vmem:[#allocation5 + $0x20] sm:$0xff] }
  0x1f   :  { %182 = vmatpush.msra.mxu1 %v76_v38  ;;  %163 = vmatpush.msra.mxu0 %v59_v41  ;;  %v73_v55 = vld [vmem:[#allocation5 + $0xa8] sm:$0xff]  ;;  %v104_v56 = vld [vmem:[#allocation5 + $0x1a0] sm:$0xff]  ;;  %v87_v1 = vld [vmem:[#allocation5 + $0x118] sm:$0xff] }
  0x20   :  { %223 = vmatpush.msra.mxu3 %v107_v42  ;;  %204 = vmatpush.msra.mxu2 %v90_v44  ;;  %v72_v57 = vld [vmem:[#allocation5 + $0xa0] sm:$0xff]  ;;  %v487_v58 = vld.sshfl [vmem:[#allocation1] sm:$0xff pattern:$0x73625140]  ;;  %v55_v2 = vld [vmem:[#allocation5 + $0x18] sm:$0xff] }
  0x21   :  { %183 = vmatpush.msra.mxu1 %v75_v43  ;;  %164 = vmatpush.msra.mxu0 %v58_v45  ;;  %v489_v59 = vld.sshfl [vmem:[#allocation1 + $0x8] sm:$0xff pattern:$0x73625140]  ;;  %v145_v61 = vld.sshfl [vmem:[#allocation1 + $0x10] sm:$0xff pattern:$0x73625140] }
  0x22   :  { %224 = vmatpush.msra.mxu3 %v106_v47  ;;  %v146_v62 = vld.sshfl [vmem:[#allocation1 + $0x18] sm:$0xff pattern:$0x73625140]  ;;  %205 = vmatpush.msra.mxu2 %v89_v46  ;;  %v86_v4 = vld [vmem:[#allocation5 + $0x110] sm:$0xff]  ;;  %v103_v5 = vld [vmem:[#allocation5 + $0x198] sm:$0xff] }
  0x23   :  { %184 = vmatpush.msra.mxu1 %v74_v49  ;;  %165 = vmatpush.msra.mxu0 %v57_v48  ;;  %271 = vst [vmem:[#allocation1] ss:$4 sm:$0xff] %v255_v50  ;;  %v71_v6 = vld [vmem:[#allocation5 + $0x98] sm:$0xff]  ;;  %v54_v9 = vld [vmem:[#allocation5 + $0x10] sm:$0xff]  ;;  %v85_v13 = vld [vmem:[#allocation5 + $0x108] sm:$0xff] }
  0x24   :  { %225 = vmatpush.msra.mxu3 %v105_v52  ;;  %273 = vst [vmem:[#allocation1 + $0x1] ss:$4 sm:$0xff] %v257_v54  ;;  %206 = vmatpush.msra.mxu2 %v88_v51  ;;  %v147_v7 = vld.sshfl [vmem:[#allocation1 + $0x20] sm:$0xff pattern:$0x73625140]  ;;  %v53_v14 = vld [vmem:[#allocation5 + $0x8] sm:$0xff] }
  0x25   :  { %185 = vmatpush.msra.mxu1 %v73_v55  ;;  %166 = vmatpush.msra.mxu0 %v56_v53  ;;  %275 = vst [vmem:[#allocation1 + $0x2] ss:$4 sm:$0xff] %v259_v60  ;;  %v102_v11 = vld [vmem:[#allocation5 + $0x190] sm:$0xff]  ;;  %v101_v15 = vld [vmem:[#allocation5 + $0x188] sm:$0xff]  ;;  %v84_v17 = vld [vmem:[#allocation5 + $0x100] sm:$0xff] }
  0x26   :  { %226 = vmatpush.msra.mxu3 %v104_v56  ;;  %277 = vst [vmem:[#allocation1 + $0x3] ss:$4 sm:$0xff] %v261_v63  ;;  %207 = vmatpush.msra.mxu2 %v87_v1  ;;  %v70_v12 = vld [vmem:[#allocation5 + $0x90] sm:$0xff]  ;;  %v69_v16 = vld [vmem:[#allocation5 + $0x88] sm:$0xff]  ;;  %v52_v18 = vld [vmem:[#allocation5] sm:$0xff] }
  0x27   :  { %186 = vmatpush.msra.mxu1 %v72_v57  ;;  %167 = vmatpush.msra.mxu0 %v55_v2  ;;  %279 = vst [vmem:[#allocation1 + $0x20] ss:$4 sm:$0xff] %v256_v0  ;;  %v100_v19 = vld [vmem:[#allocation5 + $0x180] sm:$0xff]  ;;  %v119_v21 = vld [vmem:[#allocation5 + $0x218] sm:$0xff]  ;;  %v118_v26 = vld [vmem:[#allocation5 + $0x210] sm:$0xff] }
  0x28   :  { %227 = vmatpush.msra.mxu3 %v103_v5  ;;  %281 = vst [vmem:[#allocation1 + $0x21] ss:$4 sm:$0xff] %v258_v3  ;;  %208 = vmatpush.msra.mxu2 %v86_v4  ;;  %v68_v20 = vld [vmem:[#allocation5 + $0x80] sm:$0xff]  ;;  %v117_v29 = vld [vmem:[#allocation5 + $0x208] sm:$0xff] }
  0x29   :  { %187 = vmatpush.msra.mxu1 %v71_v6  ;;  %168 = vmatpush.msra.mxu0 %v54_v9  ;;  %283 = vst [vmem:[#allocation1 + $0x22] ss:$4 sm:$0xff] %v260_v8  ;;  %v116_v33 = vld [vmem:[#allocation5 + $0x200] sm:$0xff] }
  0x2a   :  { %228 = vmatpush.msra.mxu3 %v102_v11  ;;  %285 = vst [vmem:[#allocation1 + $0x23] ss:$4 sm:$0xff] %v262_v10  ;;  %209 = vmatpush.msra.mxu2 %v85_v13 }
  0x2b   :  { %188 = vmatpush.msra.mxu1 %v70_v12  ;;  %169 = vmatpush.msra.mxu0 %v53_v14 }
  0x2c   :  { %229 = vmatpush.msra.mxu3 %v101_v15  ;;  %210 = vmatpush.msra.mxu2 %v84_v17 }
  0x2d   :  { %189 = vmatpush.msra.mxu1 %v69_v16  ;;  %170 = vmatpush.msra.mxu0 %v52_v18  ;;  %v286_v22 = vld.sshfl [vmem:[#allocation1] sm:$0xff pattern:$0x73625140]  ;;  %v287_v23 = vld.sshfl [vmem:[#allocation1 + $0x8] sm:$0xff pattern:$0x73625140] }
  0x2e   :  { %211 = vmatmul.f32.vlgmr.msra.gmra.mxu2 %v145_v61  ;;  %230 = vmatpush.msra.mxu3 %v100_v19  ;;  %v288_v24 = vld.sshfl [vmem:[#allocation1 + $0x10] sm:$0xff pattern:$0x73625140]  ;;  %v296_v25 = vadd.f32 %v287_v23, %v286_v22  ;;  %v289_v27 = vld.sshfl [vmem:[#allocation1 + $0x18] sm:$0xff pattern:$0x73625140] }
  0x2f   :  { %171 = vmatmul.f32.vlgmr.msra.gmra.mxu0 %v487_v58  ;;  %231 = vmatmul.f32.vlgmr.msra.gmra.mxu3 %v146_v62 }
  0x30   :  { %190 = vmatpush.msra.mxu1 %v68_v20  ;;  %247 = vmatpush.msrb.mxu0 %v119_v21  ;;  %v297_v28 = vadd.f32 %v296_v25, %v288_v24 }
  0x31   :  { %191 = vmatmul.f32.vlgmr.msra.gmra.mxu1 %v489_v59  ;;  %v290_v30 = vld.sshfl [vmem:[#allocation1 + $0x20] sm:$0xff pattern:$0x73625140] }
  0x32   :  { %248 = vmatpush.msrb.mxu0 %v118_v26  ;;  %v298_v31 = vadd.f32 %v297_v28, %v289_v27  ;;  %v299_v32 = vsel %vm152_vm0, %v290_v30, 0.0 }
  0x34   :  { %249 = vmatpush.msrb.mxu0 %v117_v29  ;;  %v300_v34 = vadd.f32 %v299_v32, %v298_v31 }
  0x36   :  { %250 = vmatpush.msrb.mxu0 %v116_v33  ;;  %301 = vadd.xlane.f32.xlu0 %v300_v34 }
  0x37   :  { %353 = vmatmul.msk.f32.vlgmr.msrb.gmra.mxu0 %vm152_vm0, %v147_v7 }
  0xa9   :  { %v302_v35 = vpop.xlane.xlu0 %301 }
  0xaa   :  { %363 = vrsqrt.f32 %v302_v35  ;;  %vm310_vm1 = vcmp.eq.f32.partialorder %v302_v35, inf  ;;  %v313_v43 = vand.u32 2147483648, %v302_v35  ;;  %vm312_vm2 = vcmp.eq.f32.partialorder %v302_v35, 0.0 }
  0xac   :  { %v172_v48 = vpop.f32.mrf.mxu0 }
  0xae   :  { %v192_v47 = vpop.f32.mrf.mxu1 }
  0xaf   :  { %v193_v49 = vadd.f32 %v192_v47, %v172_v48 }
  0xb0   :  { %v364_v36 = vpop.eup %363 }
  0xb1   :  { %v304_v37 = vmul.f32 %v364_v36, %v302_v35  ;;  %v212_v51 = vpop.f32.mrf.mxu2 }
  0xb2   :  { %v213_v53 = vadd.f32 %v212_v51, %v193_v49  ;;  %v232_v55 = vpop.f32.mrf.mxu3 }
  0xb3   :  { %v305_v38 = vmul.f32 %v364_v36, %v304_v37 }
  0xb4   :  { %v233_v59 = vadd.f32 %v232_v55, %v213_v53  ;;  %v252_v61 = vpop.f32.mrf.mxu0 }
  0xb5   :  { %v306_v39 = vmul.f32 0.5, %v305_v38 }
  0xb6   :  { %v253_v1 = vadd.f32 %v252_v61, %v233_v59 }
  0xb7   :  { %v307_v40 = vsub.f32 1.5, %v306_v39 }
  0xb9   :  { %v308_v41 = vmul.f32 %v364_v36, %v307_v40 }
  0xbb   :  { %v309_v42 = vmul.f32 %v308_v41, %v302_v35 }
  0xbd   :  { %v311_v44 = vsel %vm310_vm1, %v302_v35, %v309_v42 }
  0xbe   :  { %v314_v45 = vsel %vm312_vm2, %v313_v43, %v311_v44 }
  0xbf   :  { %v315_v46 = vadd.f32 1e-05, %v314_v45 }
  0xc1   :  { %365 = vrcp.f32 %v315_v46  ;;  %v327_v56 = vand.u32 2147483648, %v315_v46  ;;  %v325_v58 = vand.u32 2147483647, %v315_v46  ;;  %vm321_vm4 = vweird.f32 %v315_v46 }
  0xc3   :  { %v328_v62 = vor.u32 1.1754944e-38, %v327_v56  ;;  %vm326_vm6 = vcmp.eq.f32.partialorder %v325_v58, 8.507059e+37 }
  0xc7   :  { %v366_v50 = vpop.eup %365 }
  0xc8   :  { %v317_v52 = vmul.f32 %v366_v50, %v315_v46  ;;  %vm322_vm3 = vweird.f32 %v366_v50 }
  0xc9   :  { %vm323_vm5 = vmor %vm321_vm4, %vm322_vm3 }
  0xca   :  { %v318_v54 = vsub.f32 1.0, %v317_v52 }
  0xcc   :  { %v319_v57 = vmul.f32 %v366_v50, %v318_v54 }
  0xce   :  { %v320_v60 = vadd.f32 %v366_v50, %v319_v57 }
  0xd0   :  { %v324_v63 = vsel %vm323_vm5, %v366_v50, %v320_v60 }
  0xd1   :  { %v329_v0 = vsel %vm326_vm6, %v328_v62, %v324_v63 }
  0xd2   :  { %v330_v2 = vmul.f32 2.0, %v329_v0 }
  0xd4   :  { %v331_v3 = vmul.f32 %v330_v2, %v253_v1 }
  0xd6   :  { %332 = vst [vmem:[#allocation7] sm:$0xff] %v331_v3 }
  0xd7   :  { %336 = vsyncadd [#allocation4], 96  ;;  %s339_s23 = sshll.u32 %s508_s2, 4  ;;  %s451_s24 = smov [#allocation7]   ;;  %s340_s23 = int_to_ptr.hbm [resolvable:$true] %s339_s23 }
  0xd8   :  { %s337_s25 = sshll.u32 %s451_s24, 4  ;;  %s452_s26 = smov 32   ;;  %s338_s25 = int_to_ptr.vmem [resolvable:$true] %s337_s25 }
  0xd9   :  { %s453_s27 = smov 2  }
  0xda   :  { %345 = dma.vmem_to_hbm [thread:$0]  %s338_s25, 32, %s340_s23, [#allocation4], %s452_s26, %s452_s26, %s453_s27  }
  0xdb   :  { %443 = dma.done.wait [#allocation4], 128  }
  0xdc   :  { %444 = vsyncadd [#allocation4], 4294967168 }
  0xdd   :  { %350 = vsyncpa [#allocation3], 1 }
  0xde   :  { %351 = vsyncpa [#allocation6], 1 }
  0xdf   :  { %352 = vsyncpa [#allocation4], 1 }

</bundles_post_ra>
